<compile_context>
chip_gen: v7x
topology: tpu7x:2x2x1
jax: 0.10.0
libtpu: 0.0.40
codegen_flags: <defaults>
</compile_context>

<pallas_src>
import functools

import jax
import jax.numpy as jnp
from jax import lax
from jax.experimental import pallas as pl
from jax.experimental.pallas import tpu as pltpu

_MASK_BIAS = -1e30  # large finite negative: exp() underflows to exactly 0 in f32


def _full_attention_kernel(q_ref, k_ref, v_ref, qb_ref, kvb_ref, o_ref, *,
                           num_heads, head_dim):
    # q_ref: (1, TL, H*D)   k_ref / v_ref: (1, S, H*D)
    # qb_ref: (1, TL, 1)    kvb_ref: (1, 1, S)         o_ref: (1, TL, H*D)
    q = q_ref[0]                                    # (TL, H*D)
    k = k_ref[0]                                    # (S,  H*D)
    v = v_ref[0]                                    # (S,  H*D)
    bias = qb_ref[0] + kvb_ref[0]                   # (TL, S) additive mask bias
    temp = 1.0 / float(head_dim) ** 0.5

    outs = []
    for h in range(num_heads):                      # static unroll (H is small)
        lo = h * head_dim
        qh = q[:, lo:lo + head_dim]                 # (TL, D)
        kh = k[:, lo:lo + head_dim]                 # (S,  D)
        vh = v[:, lo:lo + head_dim]                 # (S,  D)

        # scores[l, s] = sum_d qh[l, d] * kh[s, d]  -- contract last dims, no kh.T
        scores = lax.dot_general(
            qh, kh, dimension_numbers=(((1,), (1,)), ((), ())),
            preferred_element_type=jnp.float32)     # (TL, S) f32
        scaled = temp * scores + bias

        m = jnp.max(scaled, axis=-1, keepdims=True)
        p = jnp.exp(scaled - m)                     # (TL, S) f32
        denom = jnp.sum(p, axis=-1, keepdims=True)  # (TL, 1)

        pv = jnp.dot(p.astype(vh.dtype), vh,
                     preferred_element_type=jnp.float32)        # (TL, D)
        # normalize after P@V: L*D multiplies instead of L*S; reciprocal on EUP
        outs.append(pv * pl.reciprocal(denom, approx=True))

    # single lane-dense store of the whole (TL, H*D) slab
    o_ref[0] = jnp.concatenate(outs, axis=-1).astype(o_ref.dtype)


def _pick_l_tile(L):
    for t in (512, 256, 128, 64, 32, 16, 8):
        if L % t == 0:
            return t
    return L   # small / odd L: single full tile (block == full dim is always legal)


def full_attention(queries, keys, values, q_mask=None, kv_mask=None):
    """queries [N,L,H,D], keys/values [N,S,H,D], q_mask [N,L], kv_mask [N,S].
    Returns [N,L,H,D] in the input dtype."""
    N, L, H, D = queries.shape
    S = keys.shape[1]
    HD = H * D

    # free trailing-dim merges (metadata-only reshape, unlike a transpose)
    q = queries.reshape(N, L, HD)
    k = keys.reshape(N, S, HD)
    v = values.reshape(N, S, HD)

    # additive mask biases (0 = keep, -1e30 = masked); built once per call
    if kv_mask is not None:
        kvb = jnp.where(jnp.asarray(kv_mask).astype(bool), 0.0,
                        _MASK_BIAS).astype(jnp.float32).reshape(N, 1, S)
        if q_mask is not None:
            qb = jnp.where(jnp.asarray(q_mask).astype(bool), 0.0,
                           _MASK_BIAS).astype(jnp.float32).reshape(N, L, 1)
        else:
            qb = jnp.zeros((N, L, 1), jnp.float32)
    else:
        qb = jnp.zeros((N, L, 1), jnp.float32)
        kvb = jnp.zeros((N, 1, S), jnp.float32)

    TL = _pick_l_tile(L)
    grid = (N, L // TL)

    kernel = functools.partial(_full_attention_kernel, num_heads=H, head_dim=D)

    out = pl.pallas_call(
        kernel,
        out_shape=jax.ShapeDtypeStruct((N, L, HD), queries.dtype),
        grid_spec=pltpu.PrefetchScalarGridSpec(
            num_scalar_prefetch=0,
            grid=grid,
            in_specs=[
                pl.BlockSpec((1, TL, HD), lambda n, lt: (n, lt, 0)),  # q
                pl.BlockSpec((1, S, HD), lambda n, lt: (n, 0, 0)),    # k (lt-invariant)
                pl.BlockSpec((1, S, HD), lambda n, lt: (n, 0, 0)),    # v (lt-invariant)
                pl.BlockSpec((1, TL, 1), lambda n, lt: (n, lt, 0)),   # q bias
                pl.BlockSpec((1, 1, S), lambda n, lt: (n, 0, 0)),     # kv bias (lt-invariant)
            ],
            out_specs=pl.BlockSpec((1, TL, HD), lambda n, lt: (n, lt, 0)),
        ),
        compiler_params=pltpu.CompilerParams(
            dimension_semantics=("parallel", "parallel"),
            # raise v5e/v6e default scoped VMEM; still fits v7x's 64 MiB physical
            vmem_limit_bytes=48 * 1024 * 1024,
        ),
    )(q, k, v, qb, kvb)

    return out.reshape(N, L, H, D)


def _reference(queries, keys, values, q_mask=None, kv_mask=None):
    QK = jnp.einsum('nlhd,nshd->nlsh', queries, keys)
    if kv_mask is not None:
        m = (q_mask[:, :, None, None] * kv_mask[:, None, :, None]) > 0
        QK = jnp.where(m, QK, -jnp.inf)
    temp = 1.0 / queries.shape[3] ** 0.5
    A = jax.nn.softmax(temp * QK, axis=2)
    return jnp.einsum('nlsh,nshd->nlhd', A, values)


if __name__ == "__main__":
    key = jax.random.PRNGKey(0)
    N, L, S, H, D = 2, 8, 8, 4, 32
    kq, kk, kv = jax.random.split(key, 3)
    queries = jax.random.normal(kq, (N, L, H, D), dtype=jnp.float32)
    keys = jax.random.normal(kk, (N, S, H, D), dtype=jnp.float32)
    values = jax.random.normal(kv, (N, S, H, D), dtype=jnp.float32)

    # masks: all queries valid, last two keys of each batch masked out
    q_mask = jnp.ones((N, L), dtype=jnp.bool_)
    kv_mask = jnp.concatenate(
        [jnp.ones((N, S - 2), dtype=jnp.bool_), jnp.zeros((N, 2), dtype=jnp.bool_)],
        axis=1)

    # unmasked path
    out_nomask = full_attention(queries, keys, values)
    jax.block_until_ready(out_nomask)
    ref_nomask = _reference(queries, keys, values)

    # masked path
    out_mask = full_attention(queries, keys, values, q_mask, kv_mask)
    jax.block_until_ready(out_mask)
    ref_mask = _reference(queries, keys, values, q_mask, kv_mask)

    assert out_nomask.shape == (N, L, H, D)
    # approx=True reciprocal (EUP) leaves a small (~1e-3-level) relative error
    assert jnp.allclose(out_nomask, ref_nomask, atol=5e-3, rtol=5e-3)
    assert jnp.allclose(out_mask, ref_mask, atol=5e-3, rtol=5e-3)

    print("KERNEL_OK")
</pallas_src>

<mosaic_0001>
module attributes {stable_mosaic.version = 11 : i64} {
  func.func @_full_attention_kernel(%arg0: i32, %arg1: i32, %arg2: memref<1x8x128xf32, #tpu.memory_space<vmem>>, %arg3: memref<1x8x128xf32, #tpu.memory_space<vmem>>, %arg4: memref<1x8x128xf32, #tpu.memory_space<vmem>>, %arg5: memref<1x8x1xf32, #tpu.memory_space<vmem>>, %arg6: memref<1x1x8xf32, #tpu.memory_space<vmem>>, %arg7: memref<1x8x128xf32, #tpu.memory_space<vmem>>) attributes {dimension_semantics = [#tpu.dimension_semantics<parallel>, #tpu.dimension_semantics<parallel>], iteration_bounds = array<i64: 2, 1>, scalar_prefetch = 0 : i64, scratch_operands = 0 : i64, tpu.core_type = #tpu.core_type<tc>, window_params = [{transform_indices = @transform_0, window_bounds = array<i64: 1, 8, 128>}, {transform_indices = @transform_1, window_bounds = array<i64: 1, 8, 128>}, {transform_indices = @transform_2, window_bounds = array<i64: 1, 8, 128>}, {transform_indices = @transform_3, window_bounds = array<i64: 1, 8, 1>}, {transform_indices = @transform_4, window_bounds = array<i64: 1, 1, 8>}, {transform_indices = @transform_5, window_bounds = array<i64: 1, 8, 128>}]} {
    %c0 = arith.constant 0 : index
    %c0_0 = arith.constant 0 : index
    %c0_1 = arith.constant 0 : index
    %0 = vector.load %arg2[%c0, %c0_0, %c0_1] : memref<1x8x128xf32, #tpu.memory_space<vmem>>, vector<1x8x128xf32>
    %1 = vector.shape_cast %0 : vector<1x8x128xf32> to vector<8x128xf32>
    %c0_2 = arith.constant 0 : index
    %c0_3 = arith.constant 0 : index
    %c0_4 = arith.constant 0 : index
    %2 = vector.load %arg3[%c0_2, %c0_3, %c0_4] : memref<1x8x128xf32, #tpu.memory_space<vmem>>, vector<1x8x128xf32>
    %3 = vector.shape_cast %2 : vector<1x8x128xf32> to vector<8x128xf32>
    %c0_5 = arith.constant 0 : index
    %c0_6 = arith.constant 0 : index
    %c0_7 = arith.constant 0 : index
    %4 = vector.load %arg4[%c0_5, %c0_6, %c0_7] : memref<1x8x128xf32, #tpu.memory_space<vmem>>, vector<1x8x128xf32>
    %5 = vector.shape_cast %4 : vector<1x8x128xf32> to vector<8x128xf32>
    %c0_8 = arith.constant 0 : index
    %c0_9 = arith.constant 0 : index
    %c0_10 = arith.constant 0 : index
    %6 = vector.load %arg5[%c0_8, %c0_9, %c0_10] : memref<1x8x1xf32, #tpu.memory_space<vmem>>, vector<1x8x1xf32>
    %7 = vector.shape_cast %6 : vector<1x8x1xf32> to vector<8x1xf32>
    %c0_11 = arith.constant 0 : index
    %c0_12 = arith.constant 0 : index
    %c0_13 = arith.constant 0 : index
    %8 = vector.load %arg6[%c0_11, %c0_12, %c0_13] : memref<1x1x8xf32, #tpu.memory_space<vmem>>, vector<1x1x8xf32>
    %9 = vector.shape_cast %8 : vector<1x1x8xf32> to vector<1x8xf32>
    %10 = vector.broadcast %7 : vector<8x1xf32> to vector<8x8xf32>
    %11 = vector.broadcast %9 : vector<1x8xf32> to vector<8x8xf32>
    %12 = arith.addf %10, %11 : vector<8x8xf32>
    %13 = vector.extract_strided_slice %1 {offsets = [0, 0], sizes = [8, 32], strides = [1, 1]} : vector<8x128xf32> to vector<8x32xf32>
    %14 = vector.extract_strided_slice %3 {offsets = [0, 0], sizes = [8, 32], strides = [1, 1]} : vector<8x128xf32> to vector<8x32xf32>
    %15 = vector.extract_strided_slice %5 {offsets = [0, 0], sizes = [8, 32], strides = [1, 1]} : vector<8x128xf32> to vector<8x32xf32>
    %cst = arith.constant dense<0.000000e+00> : vector<8x8xf32>
    %16 = tpu.matmul %13, %14, %cst {dimension_numbers = #tpu.dot_dimension_numbers<[1], [1], [0], [0], [0, 0, 1, 0], [], []>} : vector<8x32xf32>, vector<8x32xf32>, vector<8x8xf32> -> vector<8x8xf32>
    %cst_14 = arith.constant 0.176776692 : f32
    %17 = vector.broadcast %cst_14 : f32 to vector<8x8xf32>
    %18 = arith.mulf %17, %16 : vector<8x8xf32>
    %19 = arith.addf %18, %12 : vector<8x8xf32>
    %cst_15 = arith.constant dense<0xFF800000> : vector<8xf32>
    %20 = vector.multi_reduction <maximumf>, %19, %cst_15 [1] : vector<8x8xf32> to vector<8xf32>
    %21 = vector.shape_cast %20 : vector<8xf32> to vector<8x1xf32>
    %22 = vector.broadcast %21 : vector<8x1xf32> to vector<8x8xf32>
    %23 = arith.subf %19, %22 : vector<8x8xf32>
    %24 = math.exp %23 : vector<8x8xf32>
    %cst_16 = arith.constant dense<0.000000e+00> : vector<8xf32>
    %25 = vector.multi_reduction <add>, %24, %cst_16 [1] : vector<8x8xf32> to vector<8xf32>
    %26 = vector.shape_cast %25 : vector<8xf32> to vector<8x1xf32>
    %cst_17 = arith.constant dense<0.000000e+00> : vector<8x32xf32>
    %27 = tpu.matmul %24, %15, %cst_17 {dimension_numbers = #tpu.dot_dimension_numbers<[1], [0], [0], [1], [0, 0, 1, 1], [], []>} : vector<8x8xf32>, vector<8x32xf32>, vector<8x32xf32> -> vector<8x32xf32>
    %28 = tpu.reciprocal %26 {approx = true} : vector<8x1xf32> -> vector<8x1xf32>
    %29 = vector.broadcast %28 : vector<8x1xf32> to vector<8x32xf32>
    %30 = arith.mulf %27, %29 : vector<8x32xf32>
    %31 = vector.extract_strided_slice %1 {offsets = [0, 32], sizes = [8, 32], strides = [1, 1]} : vector<8x128xf32> to vector<8x32xf32>
    %32 = vector.extract_strided_slice %3 {offsets = [0, 32], sizes = [8, 32], strides = [1, 1]} : vector<8x128xf32> to vector<8x32xf32>
    %33 = vector.extract_strided_slice %5 {offsets = [0, 32], sizes = [8, 32], strides = [1, 1]} : vector<8x128xf32> to vector<8x32xf32>
    %cst_18 = arith.constant dense<0.000000e+00> : vector<8x8xf32>
    %34 = tpu.matmul %31, %32, %cst_18 {dimension_numbers = #tpu.dot_dimension_numbers<[1], [1], [0], [0], [0, 0, 1, 0], [], []>} : vector<8x32xf32>, vector<8x32xf32>, vector<8x8xf32> -> vector<8x8xf32>
    %cst_19 = arith.constant 0.176776692 : f32
    %35 = vector.broadcast %cst_19 : f32 to vector<8x8xf32>
    %36 = arith.mulf %35, %34 : vector<8x8xf32>
    %37 = arith.addf %36, %12 : vector<8x8xf32>
    %cst_20 = arith.constant dense<0xFF800000> : vector<8xf32>
    %38 = vector.multi_reduction <maximumf>, %37, %cst_20 [1] : vector<8x8xf32> to vector<8xf32>
    %39 = vector.shape_cast %38 : vector<8xf32> to vector<8x1xf32>
    %40 = vector.broadcast %39 : vector<8x1xf32> to vector<8x8xf32>
    %41 = arith.subf %37, %40 : vector<8x8xf32>
    %42 = math.exp %41 : vector<8x8xf32>
    %cst_21 = arith.constant dense<0.000000e+00> : vector<8xf32>
    %43 = vector.multi_reduction <add>, %42, %cst_21 [1] : vector<8x8xf32> to vector<8xf32>
    %44 = vector.shape_cast %43 : vector<8xf32> to vector<8x1xf32>
    %cst_22 = arith.constant dense<0.000000e+00> : vector<8x32xf32>
    %45 = tpu.matmul %42, %33, %cst_22 {dimension_numbers = #tpu.dot_dimension_numbers<[1], [0], [0], [1], [0, 0, 1, 1], [], []>} : vector<8x8xf32>, vector<8x32xf32>, vector<8x32xf32> -> vector<8x32xf32>
    %46 = tpu.reciprocal %44 {approx = true} : vector<8x1xf32> -> vector<8x1xf32>
    %47 = vector.broadcast %46 : vector<8x1xf32> to vector<8x32xf32>
    %48 = arith.mulf %45, %47 : vector<8x32xf32>
    %49 = vector.extract_strided_slice %1 {offsets = [0, 64], sizes = [8, 32], strides = [1, 1]} : vector<8x128xf32> to vector<8x32xf32>
    %50 = vector.extract_strided_slice %3 {offsets = [0, 64], sizes = [8, 32], strides = [1, 1]} : vector<8x128xf32> to vector<8x32xf32>
    %51 = vector.extract_strided_slice %5 {offsets = [0, 64], sizes = [8, 32], strides = [1, 1]} : vector<8x128xf32> to vector<8x32xf32>
    %cst_23 = arith.constant dense<0.000000e+00> : vector<8x8xf32>
    %52 = tpu.matmul %49, %50, %cst_23 {dimension_numbers = #tpu.dot_dimension_numbers<[1], [1], [0], [0], [0, 0, 1, 0], [], []>} : vector<8x32xf32>, vector<8x32xf32>, vector<8x8xf32> -> vector<8x8xf32>
    %cst_24 = arith.constant 0.176776692 : f32
    %53 = vector.broadcast %cst_24 : f32 to vector<8x8xf32>
    %54 = arith.mulf %53, %52 : vector<8x8xf32>
    %55 = arith.addf %54, %12 : vector<8x8xf32>
    %cst_25 = arith.constant dense<0xFF800000> : vector<8xf32>
    %56 = vector.multi_reduction <maximumf>, %55, %cst_25 [1] : vector<8x8xf32> to vector<8xf32>
    %57 = vector.shape_cast %56 : vector<8xf32> to vector<8x1xf32>
    %58 = vector.broadcast %57 : vector<8x1xf32> to vector<8x8xf32>
    %59 = arith.subf %55, %58 : vector<8x8xf32>
    %60 = math.exp %59 : vector<8x8xf32>
    %cst_26 = arith.constant dense<0.000000e+00> : vector<8xf32>
    %61 = vector.multi_reduction <add>, %60, %cst_26 [1] : vector<8x8xf32> to vector<8xf32>
    %62 = vector.shape_cast %61 : vector<8xf32> to vector<8x1xf32>
    %cst_27 = arith.constant dense<0.000000e+00> : vector<8x32xf32>
    %63 = tpu.matmul %60, %51, %cst_27 {dimension_numbers = #tpu.dot_dimension_numbers<[1], [0], [0], [1], [0, 0, 1, 1], [], []>} : vector<8x8xf32>, vector<8x32xf32>, vector<8x32xf32> -> vector<8x32xf32>
    %64 = tpu.reciprocal %62 {approx = true} : vector<8x1xf32> -> vector<8x1xf32>
    %65 = vector.broadcast %64 : vector<8x1xf32> to vector<8x32xf32>
    %66 = arith.mulf %63, %65 : vector<8x32xf32>
    %67 = vector.extract_strided_slice %1 {offsets = [0, 96], sizes = [8, 32], strides = [1, 1]} : vector<8x128xf32> to vector<8x32xf32>
    %68 = vector.extract_strided_slice %3 {offsets = [0, 96], sizes = [8, 32], strides = [1, 1]} : vector<8x128xf32> to vector<8x32xf32>
    %69 = vector.extract_strided_slice %5 {offsets = [0, 96], sizes = [8, 32], strides = [1, 1]} : vector<8x128xf32> to vector<8x32xf32>
    %cst_28 = arith.constant dense<0.000000e+00> : vector<8x8xf32>
    %70 = tpu.matmul %67, %68, %cst_28 {dimension_numbers = #tpu.dot_dimension_numbers<[1], [1], [0], [0], [0, 0, 1, 0], [], []>} : vector<8x32xf32>, vector<8x32xf32>, vector<8x8xf32> -> vector<8x8xf32>
    %cst_29 = arith.constant 0.176776692 : f32
    %71 = vector.broadcast %cst_29 : f32 to vector<8x8xf32>
    %72 = arith.mulf %71, %70 : vector<8x8xf32>
    %73 = arith.addf %72, %12 : vector<8x8xf32>
    %cst_30 = arith.constant dense<0xFF800000> : vector<8xf32>
    %74 = vector.multi_reduction <maximumf>, %73, %cst_30 [1] : vector<8x8xf32> to vector<8xf32>
    %75 = vector.shape_cast %74 : vector<8xf32> to vector<8x1xf32>
    %76 = vector.broadcast %75 : vector<8x1xf32> to vector<8x8xf32>
    %77 = arith.subf %73, %76 : vector<8x8xf32>
    %78 = math.exp %77 : vector<8x8xf32>
    %cst_31 = arith.constant dense<0.000000e+00> : vector<8xf32>
    %79 = vector.multi_reduction <add>, %78, %cst_31 [1] : vector<8x8xf32> to vector<8xf32>
    %80 = vector.shape_cast %79 : vector<8xf32> to vector<8x1xf32>
    %cst_32 = arith.constant dense<0.000000e+00> : vector<8x32xf32>
    %81 = tpu.matmul %78, %69, %cst_32 {dimension_numbers = #tpu.dot_dimension_numbers<[1], [0], [0], [1], [0, 0, 1, 1], [], []>} : vector<8x8xf32>, vector<8x32xf32>, vector<8x32xf32> -> vector<8x32xf32>
    %82 = tpu.reciprocal %80 {approx = true} : vector<8x1xf32> -> vector<8x1xf32>
    %83 = vector.broadcast %82 : vector<8x1xf32> to vector<8x32xf32>
    %84 = arith.mulf %81, %83 : vector<8x32xf32>
    %85 = tpu.concatenate %30, %48, %66, %84 in 1 : vector<8x32xf32>, vector<8x32xf32>, vector<8x32xf32>, vector<8x32xf32> -> vector<8x128xf32>
    %c0_33 = arith.constant 0 : index
    %c0_34 = arith.constant 0 : index
    %c0_35 = arith.constant 0 : index
    %86 = vector.load %arg7[%c0_33, %c0_34, %c0_35] : memref<1x8x128xf32, #tpu.memory_space<vmem>>, vector<1x8x128xf32>
    %87 = vector.shape_cast %86 : vector<1x8x128xf32> to vector<8x128xf32>
    %88 = vector.shape_cast %85 : vector<8x128xf32> to vector<1x8x128xf32>
    tpu.vector_store %arg7[%c0_33, %c0_34, %c0_35], %88 {strides = array<i32>} : memref<1x8x128xf32, #tpu.memory_space<vmem>>, vector<1x8x128xf32>,
    return
  }
  func.func @transform_0(%arg0: i32, %arg1: i32) -> (i32, i32, i32) {
    %c0_i32 = arith.constant 0 : i32
    %c0_i32_0 = arith.constant 0 : i32
    return %arg0, %arg1, %c0_i32 : i32, i32, i32
  }
  func.func @transform_1(%arg0: i32, %arg1: i32) -> (i32, i32, i32) {
    %c0_i32 = arith.constant 0 : i32
    %c0_i32_0 = arith.constant 0 : i32
    %c0_i32_1 = arith.constant 0 : i32
    return %arg0, %c0_i32, %c0_i32_0 : i32, i32, i32
  }
  func.func @transform_2(%arg0: i32, %arg1: i32) -> (i32, i32, i32) {
    %c0_i32 = arith.constant 0 : i32
    %c0_i32_0 = arith.constant 0 : i32
    %c0_i32_1 = arith.constant 0 : i32
    return %arg0, %c0_i32, %c0_i32_0 : i32, i32, i32
  }
  func.func @transform_3(%arg0: i32, %arg1: i32) -> (i32, i32, i32) {
    %c0_i32 = arith.constant 0 : i32
    %c0_i32_0 = arith.constant 0 : i32
    return %arg0, %arg1, %c0_i32 : i32, i32, i32
  }
  func.func @transform_4(%arg0: i32, %arg1: i32) -> (i32, i32, i32) {
    %c0_i32 = arith.constant 0 : i32
    %c0_i32_0 = arith.constant 0 : i32
    %c0_i32_1 = arith.constant 0 : i32
    return %arg0, %c0_i32, %c0_i32_0 : i32, i32, i32
  }
  func.func @transform_5(%arg0: i32, %arg1: i32) -> (i32, i32, i32) {
    %c0_i32 = arith.constant 0 : i32
    %c0_i32_0 = arith.constant 0 : i32
    return %arg0, %arg1, %c0_i32 : i32, i32, i32
  }
}

</mosaic_0001>

<bundles_post_ra>
// kernel: tpu_custom_call.1
= control target key start
LH: loop header
LB: loop body
LE: loop exit
PB: predicated region body
PF: predicated region fallthrough
CT: control target
= control target key end

     0   :  { %10 = vsyncpa [#allocation3], 0  ;;  %s1884_s0 = inlined_call_operand.vmem [shape: f32[2,8,128], index: 0, kind: input, shape index: {}]   ;;  %s1885_s1 = inlined_call_operand.hbm [shape: f32[2,8,128], index: 1, kind: input, shape index: {}]   ;;  %s1886_s2 = inlined_call_operand.hbm [shape: f32[2,8,128], index: 2, kind: input, shape index: {}]   ;;  %s1887_s3 = inlined_call_operand.vmem [shape: f32[2,8,1], index: 3, kind: input, shape index: {}]   ;;  %s1888_s4 = inlined_call_operand.vmem [shape: f32[2,1,8], index: 4, kind: input, shape index: {}]   ;;  %s1889_s5 = inlined_call_operand.hbm [shape: f32[2,8,128], index: 5, kind: output, shape index: {}]  }
   0x1   :  { %12 = vsyncpa [#allocation3 + $0x1], 0 }
   0x2   :  { %13 = vsyncpa [#allocation6], 0 }
   0x3   :  { %15 = vsyncpa [#allocation6 + $0x1], 0 }
   0x4   :  { %16 = vsyncpa [#allocation4], 0 }
   0x5   :  { %18 = vsyncpa [#allocation4 + $0x1], 0  ;;  %s1582_s18 = smov 0   ;;  %s1584_s19 = smov 0  }
   0x6   :  { %s1586_s20 = smov 0   ;;  %s1588_s21 = smov 0  }
   0x7   :  { %s1590_s22 = smov 0   ;;  %s1592_s23 = smov 0  }
   0x8 LB: > { %s1218_s24 = sadd.s32 4294967295, %s1541_s23   ;;  %s1219_s25 = sadd.s32 4294967294, %s1541_s23   ;;  %s1541_s23 = sphi %s1592_s23, %s24_s23   ;;  %s1537_s22 = sphi %s1590_s22, %s1909_s22   ;;  %s1533_s21 = sphi %s1588_s21, %s1908_s21   ;;  %s1529_s20 = sphi %s1586_s20, %s1907_s20   ;;  %s1525_s19 = sphi %s1584_s19, %s1906_s19   ;;  %s1521_s18 = sphi %s1582_s18, %s1905_s18  }
   0x9   : > { %s36_s26 = sadd.s32 1, %s1537_s22  ;;  %s71_s27 = sadd.s32 1, %s1529_s20 }
   0xa   : > { %p38_p0 = scmp.ge.s32.totalorder %s36_s26, 2  ;;  %p78_p1 = scmp.ne.s32.totalorder %s1529_s20, %s1525_s19 }
   0xb   : > { %p79_p2 = scmp.eq.s32.totalorder %s1541_s23, 0  ;;  %p84_p3 = scmp.ne.s32.totalorder %s1525_s19, %s1521_s18 }
   0xc   : > { %s1911_s26 = smov (%p38_p0, %s36_s26), 0  ;;  %p85_p5 = scmp.eq.s32.totalorder %s1218_s24, 0 }
   0xd   : > { %p1623_p4 = por %p79_p2, %p78_p1  ;;  %s68_s29 = ssub.s32 %s1537_s22, %s1911_s26 }
   0xe   : > { %p190_p6 = scmp.eq.s32.totalorder %s1218_s24, 1  ;;  %p69_p7 = scmp.eq.s32.totalorder %s68_s29, 0 }
   0xf   : > { %p1629_p8 = por %p85_p5, %p84_p3  ;;  %p196_p10 = scmp.eq.s32.totalorder %s1219_s25, 1 }
  0x10   : > { %p1633_p9 = por %p190_p6, %p78_p1  ;;  %p1322_p13 = scmp.lt.s32.totalorder %s1541_s23, 2 }
  0x11   : > { %s1893_s30 = scalar_select %p1629_p8, 1, 0 }
  0x12   : > { %s1894_s6 = scalar_select %p1633_p9, 1, 0 }
  0x13   : > { %s1638_s7 = scalar_select %p69_p7, %s1529_s20, %s71_s27  }
  0x14   : > { %p1640_p11 = por %p196_p10, %p84_p3  ;;  %s1647_s9 = sand.u32 1, %s1529_s20  }
  0x15   : > { %s1222_s10 = sshll.u32 %s1647_s9, 3  ;;  %s1223_s11 = sshll.u32 %s1537_s22, 7 }
  0x16   : > { %s1895_s8 = scalar_select %p1640_p11, 1, 0 }
  0x17   : > { %s1656_s14 = scalar_lea.hbm %s1885_s1, %s1223_s11  ;;  %s230_s15 = scalar_lea.vmem [#allocation2], %s1222_s10 }
  0x18   : > { %s237_s16 = sshll.u32 %s230_s15, 4  ;;  %p1664_p0 = pnand %p1322_p13, %p1623_p4  ;;  %s1660_s16 = int_to_ptr.vmem [resolvable:$true] %s237_s16 }
  0x19   : > { %s227_s24 = scalar_lea.sflag [#allocation3], %s1647_s9  ;;  %s1395_s25 = scalar_lea.hbm %s1656_s14, 128 }
  0x1a   : > { %p1396_p3 = scmp.ne.s32.totalorder %s1656_s14, %s1395_s25  ;;  %p1397_p5 = pneg %p1664_p0 }
  0x1b   : > { %s1400_s28 = scalar_lea.hbm %s1885_s1, 256  ;;  %p1401_p4 = scmp.lt.u32.totalorder %s1656_s14, %s1885_s1 }
  0x1c   : > { %p1398_p6 = pnand %p1397_p5, %p1396_p3  ;;  %p1402_p10 = scmp.lt.u32.totalorder %s1400_s28, %s1395_s25 }
  0x1d   : > { %p1404_p12 = scmp.lt.u32.totalorder %s1395_s25, %s1656_s14 }
  0x1e   : > { %p1399_p7 = pneg %p1398_p6  ;;  %p1403_p13 = por %p1402_p10, %p1401_p4 }
  0x20   : > { %p1405_p1 = por %p1404_p12, %p1403_p13 }
  0x22   : > { %p1406_p2 = pnand %p1405_p1, %p1399_p7 }
  0x24   : > { %1409 = shalt.err (!%p1406_p2)
}
  0x25   : > { %s1410_s15 = scalar_lea.vmem %s1660_s16, 128  ;;  %s1543_s27 = smov [#allocation2]  }
  0x26   : > { %p1411_p3 = scmp.ne.s32.totalorder %s1660_s16, %s1410_s15  ;;  %s1415_s29 = sshll.u32 %s1543_s27, 4  ;;  %s1416_s29 = int_to_ptr.vmem [resolvable:$false] %s1415_s29 }
  0x27   : > { %s1417_s12 = scalar_lea.vmem %s1416_s29, 256  ;;  %p1418_p9 = scmp.lt.s32.totalorder %s1660_s16, %s1416_s29 }
  0x28   : > { %p1413_p6 = pnand %p1411_p3, %p1397_p5  ;;  %p1419_p4 = scmp.lt.s32.totalorder %s1417_s12, %s1410_s15 }
  0x2a   : > { %p1414_p11 = pneg %p1413_p6  ;;  %p1420_p10 = por %p1419_p4, %p1418_p9 }
  0x2c   : > { %p1421_p12 = pnand %p1420_p10, %p1414_p11 }
  0x2e   : > { %1424 = shalt.err (!%p1421_p12)
}
  0x2f   : > { %1314 = dma.hbm_to_vmem [thread:$0]  (!%p1664_p0), %s1656_s14, 128, %s1660_s16, %s227_s24  }
  0x30   : > { %p1897_p1 = scmp.lt.s32.totalorder %s1541_s23, 3  ;;  %p1898_p2 = scmp.ge.s32.totalorder %s1541_s23, 1 }
  0x31   : > { %s1709_s15 = scalar_lea.hbm %s1886_s2, %s1223_s11  ;;  %s248_s27 = scalar_lea.vmem [#allocation5], %s1222_s10 }
  0x32   : > { %p1700_p7 = pnand %p1898_p2, %p1897_p1  ;;  %s255_s29 = sshll.u32 %s248_s27, 4  ;;  %s256_s29 = int_to_ptr.vmem [resolvable:$true] %s255_s29 }
  0x33   : > { %s245_s14 = scalar_lea.sflag [#allocation6], %s1647_s9  ;;  %s1425_s16 = scalar_lea.hbm %s1709_s15, 128 }
  0x34   : > { %s1899_s25 = scalar_select %p1700_p7, 1, 0 }
  0x35   : > { %p1426_p9 = scmp.ne.s32.totalorder %s1709_s15, %s1425_s16  ;;  %s1430_s11 = scalar_lea.hbm %s1886_s2, 256 }
  0x36   : > { %p1431_p3 = scmp.lt.u32.totalorder %s1709_s15, %s1886_s2  ;;  %p1432_p6 = scmp.lt.u32.totalorder %s1430_s11, %s1425_s16 }
  0x37   : > { %p1428_p11 = pnand %p1426_p9, %p1397_p5  ;;  %p1434_p10 = scmp.lt.u32.totalorder %s1425_s16, %s1709_s15 }
  0x38   : > { %p1433_p4 = por %p1432_p6, %p1431_p3 }
  0x39   : > { %p1429_p13 = pneg %p1428_p11 }
  0x3a   : > { %p1435_p12 = por %p1434_p10, %p1433_p4 }
  0x3c   : > { %p1436_p1 = pnand %p1435_p12, %p1429_p13 }
  0x3e   : > { %1439 = shalt.err (!%p1436_p1)
}
  0x3f   : > { %s1440_s9 = scalar_lea.vmem %s256_s29, 128  ;;  %s1544_s10 = smov [#allocation5]  }
  0x40   : > { %p1441_p2 = scmp.ne.s32.totalorder %s256_s29, %s1440_s9  ;;  %s1445_s27 = sshll.u32 %s1544_s10, 4  ;;  %s1446_s27 = int_to_ptr.vmem [resolvable:$false] %s1445_s27 }
  0x41   : > { %s1447_s24 = scalar_lea.vmem %s1446_s27, 256  ;;  %p1448_p8 = scmp.lt.s32.totalorder %s256_s29, %s1446_s27 }
  0x42   : > { %p1443_p9 = pnand %p1441_p2, %p1397_p5  ;;  %p1449_p7 = scmp.lt.s32.totalorder %s1447_s24, %s1440_s9 }
  0x44   : > { %p1444_p11 = pneg %p1443_p9  ;;  %p1450_p3 = por %p1449_p7, %p1448_p8 }
  0x46   : > { %p1451_p6 = pnand %p1450_p3, %p1444_p11 }
  0x48   : > { %1454 = shalt.err (!%p1451_p6)
}
  0x49   : > { %1317 = dma.hbm_to_vmem [thread:$0]  (!%p1664_p0), %s1709_s15, 128, %s256_s29, %s245_s14  }
  0x4a   : > { %p1900_p13 = scmp.ne.s32.totalorder %s1899_s25, 0 }
  0x4b   : > { %s1736_s16 = sand.u32 (!%p1900_p13), 1, %s1525_s19   ;;  %p1901_p8 = scmp.ne.s32.totalorder (!%p1900_p13), %s1893_s30, 0 }
  0x4c   : > { %280 = sbr.rel (%p1900_p13) target bundleno = 1198 (0x4ae), region = 40  ;;  %s1739_s12 = sshll.u32 (!%p1900_p13), %s1736_s16, 3 }
  0x4d   : > { %s283_s11 = scalar_lea.sflag (!%p1900_p13), [#allocation3], %s1736_s16  ;;  %s286_s28 = scalar_lea.vmem (!%p1900_p13), [#allocation2], %s1739_s12 }
  0x53   : > { %1508 = dma.done.wait (%p1901_p8), %s283_s11, 128  }
  0x54   : > { %1510 = vsyncadd (%p1901_p8), %s283_s11, 4294967168  ;;  %s292_s17 = scalar_lea.sflag [#allocation6], %s1736_s16  ;;  %s295_s25 = scalar_lea.vmem [#allocation5], %s1739_s12 }
  0x55   : > { %1512 = dma.done.wait (%p1901_p8), %s292_s17, 128  }
  0x56   : > { %1514 = vsyncadd (%p1901_p8), %s292_s17, 4294967168  ;;  %p344_p0 = scmp.lt.s32.totalorder %s1533_s21, 1  ;;  %v1545_v0 = vmov 0.0   ;;  %vm1546_vm0 = vmmov 0   ;;  %v1547_v1 = vmov 0   ;;  %vm378_vm1 = vcmask 261120  }
  0x57   : > { %1265 = vmatprep.subr.mxu0 %v1545_v0  ;;  %1267 = vmatprep.mubr.msk.f32.mxu0 %vm1546_vm0, %v1545_v0  ;;  %v362_v2 = vld [vmem:[%s286_s28] sm:$0xff]  ;;  %s1548_s24 = smov 96   ;;  %s1549_s11 = smov 64   ;;  %vm457_vm2 = vcmask 64512   ;;  %v363_v13 = vld [vmem:[%s295_s25] sm:$0xff]  ;;  %vm1057_vm3 = vcmask 523264  }
  0x58   : > { %s345_s15 = scalar_select %p344_p0, %s1533_s21, 1  ;;  %1378 = vset.pattern.permute.xlu0 %v1547_v1  ;;  %1270 = vmatprep.subr.mxu1 %v1545_v0  ;;  %vm1059_vm4 = vcmask 785408  }
  0x59   : > { %1272 = vmatprep.mubr.msk.f32.mxu1 %vm1546_vm0, %v1545_v0  ;;  %1266 = vmatpush3.xpose.msk.msra.mxu0 %vm378_vm1, %v362_v2  ;;  %s1550_s28 = smov 32   ;;  %s1246_s25 = sshll.u32 %s1533_s21, 7 }
  0x5a   : > { %s1230_s30 = sshll.u32 %s345_s15, 3  ;;  %1280 = vmatprep.subr.mxu0 %v1545_v0  ;;  %544 = vrot.lane.b32.xlu1 %v362_v2, %s1548_s24  ;;  %s360_s29 = scalar_lea.vmem %s1888_s4, %s345_s15 }
  0x5b   : > { %s350_s13 = scalar_lea.vmem %s1884_s0, %s1230_s30  ;;  %s357_s27 = scalar_lea.vmem %s1887_s3, %s1230_s30  ;;  %v1232_v5 = vld [vmem:[%s360_s29] ss:$0 sm:$0xff]  ;;  %1271 = vmatpush3.msra.mxu1 %v363_v13 }
  0x5c   : > { %v364_v3 = vld [vmem:[%s357_s27] sm:$0xff]  ;;  %1275 = vmatprep.subr.mxu1 %v1545_v0  ;;  %s343_s15 = scalar_lea.vmem [#allocation7], %s1739_s12  ;;  %s1835_s10 = scalar_lea.hbm %s1889_s5, %s1246_s25 }
  0x5d   : > { %v361_v4 = vld [vmem:[%s350_s13] sm:$0xff]  ;;  %368 = vperm.xlu0 %1378, %v364_v3   ;;  %s1077_s14 = sshll.u32 %s343_s15, 4  ;;  %s1063_s21 = scalar_lea.sflag [#allocation4], %s1736_s16  ;;  %s1837_s14 = int_to_ptr.vmem [resolvable:$true] %s1077_s14 }
  0x5e   : > { %1268 = vmatmul.mubr.msk.f32.vlgmr.msra.gmra.mrb[0].mxu0 %vm378_vm1, %v361_v4  ;;  %542 = vrot.lane.b32.xlu1 %v361_v4, %s1548_s24  ;;  %s1455_s12 = scalar_lea.vmem %s1837_s14, 128  ;;  %p1902_p7 = scmp.ne.s32.totalorder %s1894_s6, 0 }
  0x5f   : > { %1282 = vmatprep.mubr.msk.f32.mxu0 %vm1546_vm0, %v1545_v0  ;;  %p1456_p5 = scmp.ne.s32.totalorder %s1837_s14, %s1455_s12  ;;  %s1551_s27 = smov [#allocation7]  }
  0x61   : > { %p1457_p4 = pnand %p1456_p5, %p1902_p7 }
  0x62   : > { %712 = vrot.lane.b32.xlu1 %v362_v2, %s1549_s11 }
  0x63   : > { %p1458_p10 = pneg %p1457_p4 }
  0x66   : > { %710 = vrot.lane.b32.xlu1 %v361_v4, %s1549_s11 }
  0x6a   : > { %879 = vrot.lane.b32.xlu1 %v362_v2, %s1550_s28 }
  0x6e   : > { %877 = vrot.lane.b32.xlu1 %v361_v4, %s1550_s28 }
  0xcc   : > { %v545_v14 = vpop.permute.xlu1 %544 }
  0xd0   : > { %v543_v17 = vpop.permute.xlu1 %542 }
  0xd4   : > { %v713_v19 = vpop.permute.xlu1 %712 }
  0xd8   : > { %v711_v20 = vpop.permute.xlu1 %710 }
  0xdc   : > { %v369_v6 = vpop.permute.xlu0 %368  ;;  %v880_v22 = vpop.permute.xlu1 %879 }
  0xdd   : > { %v377_v7 = vadd.f32 %v1232_v5, %v369_v6 }
  0xe0   : > { %v878_v23 = vpop.permute.xlu1 %877 }
 0x131   : > { %v451_v8 = vpop.f32.mrb[0].mxu0 }
 0x132   : > { %v455_v9 = vmul.f32 0.17677669, %v451_v8  ;;  %v1269_v10 = vpop.f32.mrb[1].mxu0 }
 0x134   : > { %v456_v11 = vadd.f32 %v455_v9, %v377_v7 }
 0x136   : > { %v458_v12 = vsel %vm457_vm2, %v456_v11, -inf }
 0x137   : > { %459 = vmax.xlane.f32.xlu0 %v458_v12 }
 0x14d   : > { %632 = vrot.lane.b32.xlu0 %v363_v13, %s1548_s24 }
 0x1c4   : > { %v460_v15 = vpop.xlane.xlu0 %459 }
 0x1c5   : > { %v461_v16 = vsub.f32 %v456_v11, %v460_v15 }
 0x1c7   : > { %v462_v18 = vmul.f32 1.442695, %v461_v16 }
 0x1c8   : > { %v633_v24 = vpop.permute.xlu0 %632 }
 0x1c9   : > { %1379 = vpow2.f32 %v462_v18  ;;  %1281 = vmatpush3.msra.mxu0 %v633_v24 }
 0x1ca   : > { %1290 = vmatprep.subr.mxu0 %v1545_v0 }
 0x1d3   : > { %v1786_v21 = vpop.eup %1379 }
 0x1d4   : > { %1273 = vmatmul.mubr.msk.f32.vlgmr.msra.gmra.mrb[0].mxu1 %vm457_vm2, %v1786_v21  ;;  %v464_v59 = vsel %vm457_vm2, %v1786_v21, 0.0 }
 0x1d5   : > { %1276 = vmatpush3.xpose.msk.msra.mxu1 %vm378_vm1, %v545_v14  ;;  %1277 = vmatprep.mubr.msk.f32.mxu1 %vm1546_vm0, %v1545_v0 }
 0x1d6   : > { %1285 = vmatprep.subr.mxu1 %v1545_v0 }
 0x1d8   : > { %1278 = vmatmul.mubr.msk.f32.vlgmr.msra.gmra.mrb[2].mxu1 %vm378_vm1, %v543_v17 }
 0x1d9   : > { %1286 = vmatpush3.xpose.msk.msra.mxu1 %vm378_vm1, %v713_v19  ;;  %1287 = vmatprep.mubr.msk.f32.mxu1 %vm1546_vm0, %v1545_v0 }
 0x1da   : > { %1295 = vmatprep.subr.mxu1 %v1545_v0 }
 0x1dc   : > { %1288 = vmatmul.mubr.msk.f32.vlgmr.msra.gmra.mrb[4].mxu1 %vm378_vm1, %v711_v20 }
 0x1dd   : > { %1296 = vmatpush3.xpose.msk.msra.mxu1 %vm378_vm1, %v880_v22  ;;  %1297 = vmatprep.mubr.msk.f32.mxu1 %vm1546_vm0, %v1545_v0 }
 0x1e0   : > { %1298 = vmatmul.mubr.msk.f32.vlgmr.msra.gmra.mrb[6].mxu1 %vm378_vm1, %v878_v23 }
 0x2a7   : > { %v1805_v25 = vpop.f32.mrb[0].mxu1 }
 0x2a8   : > { %v1274_v26 = vpop.f32.mrb[1].mxu1 }
 0x2ab   : > { %v616_v27 = vpop.f32.mrb[2].mxu1 }
 0x2ac   : > { %v620_v28 = vmul.f32 0.17677669, %v616_v27  ;;  %v1279_v29 = vpop.f32.mrb[3].mxu1 }
 0x2ae   : > { %v621_v30 = vadd.f32 %v620_v28, %v377_v7 }
 0x2af   : > { %v784_v31 = vpop.f32.mrb[4].mxu1 }
 0x2b0   : > { %v788_v32 = vmul.f32 0.17677669, %v784_v31  ;;  %v1289_v33 = vpop.f32.mrb[5].mxu1  ;;  %v622_v34 = vsel %vm457_vm2, %v621_v30, -inf }
 0x2b1   : > { %623 = vmax.xlane.f32.xlu1 %v622_v34 }
 0x2b2   : > { %v789_v35 = vadd.f32 %v788_v32, %v377_v7 }
 0x2b3   : > { %v951_v36 = vpop.f32.mrb[6].mxu1 }
 0x2b4   : > { %v955_v37 = vmul.f32 0.17677669, %v951_v36  ;;  %v1299_v38 = vpop.f32.mrb[7].mxu1  ;;  %v790_v39 = vsel %vm457_vm2, %v789_v35, -inf }
 0x2b5   : > { %791 = vmax.xlane.f32.xlu0 %v790_v39 }
 0x2b6   : > { %v956_v40 = vadd.f32 %v955_v37, %v377_v7 }
 0x2b8   : > { %v957_v41 = vsel %vm457_vm2, %v956_v40, -inf }
 0x2b9   : > { %958 = vmax.xlane.f32.xlu0 %v957_v41 }
 0x2c2   : > { %799 = vrot.lane.b32.xlu1 %v363_v13, %s1549_s11 }
 0x2cf   : > { %966 = vrot.lane.b32.xlu0 %v363_v13, %s1550_s28 }
 0x33e   : > { %v624_v42 = vpop.xlane.xlu1 %623 }
 0x33f   : > { %v625_v43 = vsub.f32 %v621_v30, %v624_v42 }
 0x341   : > { %v626_v44 = vmul.f32 1.442695, %v625_v43 }
 0x342   : > { %v792_v45 = vpop.xlane.xlu0 %791  ;;  %v800_v51 = vpop.permute.xlu1 %799 }
 0x343   : > { %1381 = vpow2.f32 %v626_v44  ;;  %v793_v46 = vsub.f32 %v789_v35, %v792_v45 }
 0x345   : > { %v794_v47 = vmul.f32 1.442695, %v793_v46 }
 0x346   : > { %v959_v48 = vpop.xlane.xlu0 %958 }
 0x347   : > { %1383 = vpow2.f32 %v794_v47  ;;  %v960_v49 = vsub.f32 %v956_v40, %v959_v48 }
 0x349   : > { %v961_v50 = vmul.f32 1.442695, %v960_v49 }
 0x34a   : > { %v967_v54 = vpop.permute.xlu0 %966 }
 0x34b   : > { %1385 = vpow2.f32 %v961_v50 }
 0x34d   : > { %v1382_v52 = vpop.eup %1381 }
 0x34e   : > { %1283 = vmatmul.mubr.msk.f32.vlgmr.msra.gmra.mrb[2].mxu0 %vm457_vm2, %v1382_v52  ;;  %v628_v53 = vsel %vm457_vm2, %v1382_v52, 0.0 }
 0x34f   : > { %1291 = vmatpush3.msra.mxu0 %v800_v51  ;;  %629 = vadd.xlane.f32.xlu0 %v628_v53 }
 0x350   : > { %1292 = vmatprep.mubr.msk.f32.mxu0 %vm1546_vm0, %v1545_v0  ;;  %1300 = vmatprep.subr.mxu0 %v1545_v0 }
 0x351   : > { %v1384_v55 = vpop.eup %1383 }
 0x352   : > { %1293 = vmatmul.mubr.msk.f32.vlgmr.msra.gmra.mrb[4].mxu0 %vm457_vm2, %v1384_v55  ;;  %v796_v56 = vsel %vm457_vm2, %v1384_v55, 0.0 }
 0x353   : > { %1301 = vmatpush3.msra.mxu0 %v967_v54  ;;  %797 = vadd.xlane.f32.xlu1 %v796_v56 }
 0x354   : > { %1302 = vmatprep.mubr.msk.f32.mxu0 %vm1546_vm0, %v1545_v0 }
 0x355   : > { %v1386_v57 = vpop.eup %1385 }
 0x356   : > { %1303 = vmatmul.mubr.msk.f32.vlgmr.msra.gmra.mrb[6].mxu0 %vm457_vm2, %v1386_v57  ;;  %v963_v58 = vsel %vm457_vm2, %v1386_v57, 0.0 }
 0x357   : > { %964 = vadd.xlane.f32.xlu0 %v963_v58 }
 0x35b   : > { %465 = vadd.xlane.f32.xlu0 %v464_v59 }
 0x3dc   : > { %v630_v60 = vpop.xlane.xlu0 %629 }
 0x3dd   : > { %1387 = vrcp.f32 %v630_v60 }
 0x3e0   : > { %v798_v61 = vpop.xlane.xlu1 %797 }
 0x3e1   : > { %1389 = vrcp.f32 %v798_v61 }
 0x3e4   : > { %v965_v62 = vpop.xlane.xlu0 %964 }
 0x3e5   : > { %1391 = vrcp.f32 %v965_v62 }
 0x3e7   : > { %v1388_v63 = vpop.eup %1387 }
 0x3e8   : > { %v466_v11 = vpop.xlane.xlu0 %465 }
 0x3e9   : > { %1393 = vrcp.f32 %v466_v11 }
 0x3eb   : > { %v1390_v3 = vpop.eup %1389 }
 0x3ef   : > { %v1392_v7 = vpop.eup %1391 }
 0x3f3   : > { %v1394_v12 = vpop.eup %1393 }
 0x3f4   : > { %v541_v14 = vmul.f32 %v1394_v12, %v1805_v25 }
 0x421   : > { %v704_v1 = vpop.f32.mrb[2].mxu0 }
 0x422   : > { %v709_v2 = vmul.f32 %v1388_v63, %v704_v1  ;;  %v1284_v0 = vpop.f32.mrb[3].mxu0 }
 0x424   : > { %1045 = vrot.lane.b32.xlu0 %v709_v2, %s1550_s28 }
 0x425   : > { %v871_v4 = vpop.f32.mrb[4].mxu0 }
 0x426   : > { %v876_v5 = vmul.f32 %v1390_v3, %v871_v4  ;;  %v1294_v6 = vpop.f32.mrb[5].mxu0 }
 0x428   : > { %1049 = vrot.lane.b32.xlu1 %v876_v5, %s1549_s11 }
 0x429   : > { %v1038_v8 = vpop.f32.mrb[6].mxu0 }
 0x42a   : > { %v1043_v9 = vmul.f32 %v1392_v7, %v1038_v8  ;;  %v1304_v10 = vpop.f32.mrb[7].mxu0 }
 0x42c   : > { %1053 = vrot.lane.b32.xlu0 %v1043_v9, %s1548_s24  ;;  %s1459_s24 = sshll.u32 %s1551_s27, 4  ;;  %s1460_s24 = int_to_ptr.vmem [resolvable:$false] %s1459_s24 }
 0x42d   : > { %s1461_s11 = scalar_lea.vmem %s1460_s24, 256  ;;  %p1462_p12 = scmp.lt.s32.totalorder %s1837_s14, %s1460_s24 }
 0x42e   : > { %p1463_p1 = scmp.lt.s32.totalorder %s1461_s11, %s1455_s12 }
 0x430   : > { %p1464_p2 = por %p1463_p1, %p1462_p12 }
 0x432   : > { %p1465_p9 = pnand %p1464_p2, %p1458_p10 }
 0x496   : > { %v1046_v13 = vpop.permute.xlu0 %1045 }
 0x497   : > { %v1056_v16 = vsel %vm378_vm1, %v541_v14, %v1046_v13 }
 0x49a   : > { %v1050_v15 = vpop.permute.xlu1 %1049 }
 0x49b   : > { %v1058_v17 = vsel %vm1057_vm3, %v1056_v16, %v1050_v15 }
 0x49e   : > { %v1054_v18 = vpop.permute.xlu0 %1053 }
 0x49f   : > { %v1060_v19 = vsel %vm1059_vm4, %v1058_v17, %v1054_v18 }
 0x4a0   : > { %1061 = vst [vmem:[%s343_s15] sm:$0xff] %v1060_v19 }
 0x4a1   : > { %1468 = shalt.err (!%p1465_p9)
}
 0x4a2   : > { %s1469_s16 = scalar_lea.hbm %s1835_s10, 128  ;;  %s1473_s30 = scalar_lea.hbm %s1889_s5, 256 }
 0x4a3   : > { %p1470_p11 = scmp.ne.s32.totalorder %s1835_s10, %s1469_s16  ;;  %p1474_p13 = scmp.lt.u32.totalorder %s1835_s10, %s1889_s5 }
 0x4a4   : > { %p1475_p8 = scmp.lt.u32.totalorder %s1473_s30, %s1469_s16  ;;  %p1477_p5 = scmp.lt.u32.totalorder %s1469_s16, %s1835_s10 }
 0x4a5   : > { %p1471_p3 = pnand %p1470_p11, %p1902_p7 }
 0x4a6   : > { %p1476_p0 = por %p1475_p8, %p1474_p13 }
 0x4a7   : > { %p1472_p6 = pneg %p1471_p3 }
 0x4a8   : > { %p1478_p4 = por %p1477_p5, %p1476_p0 }
 0x4aa   : > { %p1479_p10 = pnand %p1478_p4, %p1472_p6 }
 0x4ac   : > { %1482 = shalt.err (!%p1479_p10)
}
 0x4ad   : > { %1309 = dma.vmem_to_hbm [thread:$0]  (%p1902_p7), %s1837_s14, 128, %s1835_s10, %s1063_s21  }
 0x4ae PF: > { %s1089_s15 = sand.u32 1, %s1521_s18   ;;  %p1903_p12 = scmp.ne.s32.totalorder %s1895_s8, 0 }
 0x4af   : > { %p1904_p1 = scmp.ge.s32.totalorder %s1541_s23, 2  ;;  %s1090_s13 = scalar_lea.sflag [#allocation4], %s1089_s15 }
 0x4b1   : > { %p1319_p2 = pnand %p1904_p1, %p1903_p12 }
 0x4b3   : > { %1516 = dma.done.wait (!%p1319_p2), %s1090_s13, 128  }
 0x4b4   : > { %1518 = vsyncadd (!%p1319_p2), %s1090_s13, 4294967168  ;;  %s24_s23 = sadd.s32 1, %s1541_s23   ;;  %s1905_s18 = smov %s1525_s19 }
 0x4b5   : > { %p21_p9 = scmp.ge.s32.totalorder %s24_s23, 4   ;;  %s1906_s19 = smov %s1529_s20 }
 0x4b6   : > { %s1907_s20 = smov %s1638_s7  ;;  %s1908_s21 = smov %s1537_s22 }
 0x4b7   : > { %s1909_s22 = smov %s1911_s26  ;;  %23 = sbr.rel (!%p21_p9) target bundleno = 8 (0x8), region = 107 }
 0x4be   :  { %1095 = vsyncpa [#allocation3], 1 }
 0x4bf   :  { %1097 = vsyncpa [#allocation3 + $0x1], 1 }
 0x4c0   :  { %1098 = vsyncpa [#allocation6], 1 }
 0x4c1   :  { %1100 = vsyncpa [#allocation6 + $0x1], 1 }
 0x4c2   :  { %1101 = vsyncpa [#allocation4], 1 }
 0x4c3   :  { %1103 = vsyncpa [#allocation4 + $0x1], 1 }

</bundles_post_ra>
